<compile_context>
chip_gen: v5e
topology: v5e:2x2
jax: 0.10.0
libtpu: 0.0.40
codegen_flags: <defaults>
</compile_context>

<pallas_src>
import jax
import jax.numpy as jnp
from jax.experimental import pallas as pl
from jax.experimental.pallas import tpu as pltpu


def _abs_kernel(x_ref, o_ref):
    o_ref[...] = jnp.abs(x_ref[...])


_GEN_CACHE = None


def _tpu_generation() -> str:
    """Best-effort TPU generation detection ('v5e' / 'v6e' / 'v7x' / 'unknown')."""
    global _GEN_CACHE
    if _GEN_CACHE is not None:
        return _GEN_CACHE
    gen = "unknown"
    try:
        kind = jax.devices()[0].device_kind.lower()
        if "v7" in kind:
            gen = "v7x"
        elif "v6" in kind:
            gen = "v6e"
        elif "v5" in kind:
            gen = "v5e"
    except Exception:
        gen = "unknown"
    _GEN_CACHE = gen
    return gen


def pallas_abs(x: jax.Array, *, min_kernel_bytes: int = 512 * 1024) -> jax.Array:
    """Elementwise |x|, matching torch.Tensor.abs() semantics."""
    orig_shape = x.shape
    dtype = x.dtype
    n = x.size

    if n == 0:
        return x

    itemsize = jnp.dtype(dtype).itemsize
    kernel_dtype_ok = (
        (jnp.issubdtype(dtype, jnp.floating) or jnp.issubdtype(dtype, jnp.signedinteger))
        and itemsize in (1, 2, 4)
    )
    if not kernel_dtype_ok:
        # complex / 64-bit / bool / unsigned etc.: emulated or trivial on TPU.
        return jnp.abs(x)

    # Tiny tensors: a fused XLA elementwise op beats a standalone pallas_call.
    if n * itemsize < min_kernel_bytes:
        return jnp.abs(x)

    gen = _tpu_generation()
    # ~4 MiB blocks on v6e/v7x, ~2 MiB on v5e/unknown (keeps the in+out
    # double-buffered footprint under every generation's scoped-VMEM default).
    target_block_bytes = 4 * 1024 * 1024 if gen in ("v6e", "v7x") else 2 * 1024 * 1024

    # Sub-32-bit dtypes pack along sublanes: 8 rows f32, 16 bf16/f16, 32 int8.
    SUB = 8 * (4 // itemsize)

    # ---- choose the lane (cols) dimension without re-tiling copies ----
    cols = None
    last = orig_shape[-1] if len(orig_shape) >= 1 else n
    if last % 128 == 0 and last * itemsize * SUB <= target_block_bytes:
        cols = last  # layout-preserving: only collapses leading dims
    else:
        for c in (1024, 512, 256, 128):
            if n % c == 0:
                cols = c
                break
    if cols is None:
        # Ragged total size: one fused XLA pass is already at the HBM roofline;
        # pad/slice or prefix+tail stitching would only add HBM traffic.
        return jnp.abs(x)

    rows = n // cols
    x2d = x.reshape(rows, cols)

    # ---- row tiling: ~target_block_bytes per block, SUB-aligned rows ----
    tile_rows = max(SUB, (target_block_bytes // (cols * itemsize)) // SUB * SUB)
    tile_rows = min(tile_rows, rows)  # == rows is legal (block dim == array dim)
    grid_len = pl.cdiv(rows, tile_rows)

    # Only v7x has two TensorCores; forcing a split on v5e/v6e is pure overhead.
    if gen == "v7x" and grid_len == 1 and rows >= 2 * SUB:
        if rows % (2 * SUB) == 0:
            tile_rows = rows // 2  # perfectly balanced 2-way split
        else:
            # ~4 evenly sized SUB-aligned blocks so neither core idles long.
            tile_rows = max(SUB, pl.cdiv(pl.cdiv(rows, 4), SUB) * SUB)
        grid_len = pl.cdiv(rows, tile_rows)

    out2d = pl.pallas_call(
        _abs_kernel,
        out_shape=jax.ShapeDtypeStruct((rows, cols), dtype),
        grid_spec=pltpu.PrefetchScalarGridSpec(
            num_scalar_prefetch=0,
            grid=(grid_len,),
            in_specs=[pl.BlockSpec((tile_rows, cols), lambda i: (i, 0))],
            out_specs=pl.BlockSpec((tile_rows, cols), lambda i: (i, 0)),
        ),
        compiler_params=pltpu.CompilerParams(
            dimension_semantics=("parallel",),
        ),
    )(x2d)

    return out2d.reshape(orig_shape)


if __name__ == "__main__":
    key = jax.random.PRNGKey(0)
    # NCHW, matching the PyTorch convention for activation inputs.
    x = jax.random.normal(key, (2, 4, 16, 16), dtype=jnp.float32)

    # Force the Pallas kernel path (default wrapper short-circuits tiny tensors).
    y = pallas_abs(x, min_kernel_bytes=0)
    jax.block_until_ready(y)
    assert y.shape == x.shape and y.dtype == x.dtype
    assert jnp.array_equal(y, jnp.abs(x))

    # Default path for a tiny tensor (fused-XLA short-circuit).
    y2 = pallas_abs(x)
    jax.block_until_ready(y2)
    assert jnp.array_equal(y2, jnp.abs(x))

    # Lane-aligned trailing dim + packed dtype: layout-preserving kernel path.
    xb = jax.random.normal(key, (2, 8, 384), dtype=jnp.bfloat16)
    yb = pallas_abs(xb, min_kernel_bytes=0)
    jax.block_until_ready(yb)
    assert yb.shape == xb.shape and yb.dtype == xb.dtype
    assert jnp.array_equal(yb, jnp.abs(xb))

    # Ragged size: falls back to fused XLA abs (no pad/slice copies).
    xr = jax.random.normal(key, (3, 5, 7), dtype=jnp.float32)
    yr = pallas_abs(xr, min_kernel_bytes=0)
    jax.block_until_ready(yr)
    assert jnp.array_equal(yr, jnp.abs(xr))

    print("KERNEL_OK")
</pallas_src>

<mosaic_0001>
module attributes {stable_mosaic.version = 11 : i64} {
  func.func @_abs_kernel(%arg0: i32, %arg1: memref<2x1024xf32, #tpu.memory_space<vmem>>, %arg2: memref<2x1024xf32, #tpu.memory_space<vmem>>) attributes {dimension_semantics = [#tpu.dimension_semantics<parallel>], iteration_bounds = array<i64: 1>, scalar_prefetch = 0 : i64, scratch_operands = 0 : i64, tpu.core_type = #tpu.core_type<tc>, window_params = [{transform_indices = @transform_0, window_bounds = array<i64: 2, 1024>}, {transform_indices = @transform_1, window_bounds = array<i64: 2, 1024>}]} {
    %c0 = arith.constant 0 : index
    %c0_0 = arith.constant 0 : index
    %0 = vector.load %arg1[%c0, %c0_0] : memref<2x1024xf32, #tpu.memory_space<vmem>>, vector<2x1024xf32>
    %1 = math.absf %0 : vector<2x1024xf32>
    %c0_1 = arith.constant 0 : index
    %c0_2 = arith.constant 0 : index
    %2 = vector.load %arg2[%c0_1, %c0_2] : memref<2x1024xf32, #tpu.memory_space<vmem>>, vector<2x1024xf32>
    tpu.vector_store %arg2[%c0_1, %c0_2], %1 {strides = array<i32>} : memref<2x1024xf32, #tpu.memory_space<vmem>>, vector<2x1024xf32>,
    return
  }
  func.func @transform_0(%arg0: i32) -> (i32, i32) {
    %c0_i32 = arith.constant 0 : i32
    %c0_i32_0 = arith.constant 0 : i32
    return %arg0, %c0_i32 : i32, i32
  }
  func.func @transform_1(%arg0: i32) -> (i32, i32) {
    %c0_i32 = arith.constant 0 : i32
    %c0_i32_0 = arith.constant 0 : i32
    return %arg0, %c0_i32 : i32, i32
  }
}

</mosaic_0001>

<bundles_post_ra>
// kernel: tpu_custom_call.1
= control target key start
LH: loop header
LB: loop body
LE: loop exit
PB: predicated region body
PF: predicated region fallthrough
CT: control target
= control target key end

     0   :  { %6 = vsyncpa [#allocation3], 0  ;;  %s118_s0 = inlined_call_operand.hbm [shape: f32[2,1024], index: 0, kind: input, shape index: {}]   ;;  %s119_s1 = inlined_call_operand.hbm [shape: f32[2,1024], index: 1, kind: output, shape index: {}]  }
   0x1   :  { %7 = vsyncpa [#allocation4], 0  ;;  %s13_s8 = sshll.u32 %s118_s0, 4  ;;  %s100_s9 = smov [#allocation2]   ;;  %s14_s8 = int_to_ptr.hbm [resolvable:$true] %s13_s8 }
   0x2   :  { %s15_s10 = sshll.u32 %s100_s9, 4  ;;  %s16_s10 = int_to_ptr.vmem [resolvable:$true] %s15_s10 }
   0x3   :  { %18 = dma.hbm_to_vmem [thread:$0]  %s14_s8, 256, %s16_s10, [#allocation3]  }
   0x4   :  { %96 = dma.done.wait [#allocation3], 256  }
   0x5   :  { %97 = vsyncadd [#allocation3], 4294967040  ;;  %s101_s11 = smov [#allocation5]   ;;  %s36_s15 = sshll.u32 %s119_s1, 4  ;;  %v23_v0 = vld [vmem:[#allocation2] sm:$0xff]  ;;  %v24_v1 = vld [vmem:[#allocation2 + $0x8] sm:$0xff]  ;;  %s37_s15 = int_to_ptr.hbm [resolvable:$true] %s36_s15 }
   0x6   :  { %s34_s12 = sshll.u32 %s101_s11, 4  ;;  %v25_v2 = vand.u32 2147483647, %v23_v0  ;;  %v26_v3 = vand.u32 2147483647, %v24_v1  ;;  %s35_s12 = int_to_ptr.vmem [resolvable:$true] %s34_s12 }
   0x8   :  { %27 = vst [vmem:[#allocation5] sm:$0xff] %v25_v2 }
   0x9   :  { %28 = vst [vmem:[#allocation5 + $0x8] sm:$0xff] %v26_v3 }
   0xa   :  { %39 = dma.vmem_to_hbm [thread:$0]  %s35_s12, 256, %s37_s15, [#allocation4]  }
   0xb   :  { %98 = dma.done.wait [#allocation4], 256  }
   0xc   :  { %99 = vsyncadd [#allocation4], 4294967040 }
   0xd   :  { %44 = vsyncpa [#allocation3], 1 }
   0xe   :  { %45 = vsyncpa [#allocation4], 1 }

</bundles_post_ra>
